<compile_context>
chip_gen: v5e
topology: v5e:2x2
jax: 0.10.0
libtpu: 0.0.40
codegen_flags: <defaults>
</compile_context>

<pallas_src>
import functools

import jax
import jax.numpy as jnp
from jax import lax
from jax.experimental import pallas as pl
from jax.experimental.pallas import tpu as pltpu

LANE = 128
SUBLANE = 8
MAX_TILE_ROWS = 8192  # 2 inputs x 2 buffers x 8192x128 f32 = 16 MiB, fits the
                      # explicit 32 MiB vmem_limit on every generation.


def _sublane_rows(dtype):
    """Minimum row multiple for a clean (packed) sublane layout of `dtype`."""
    itemsize = jnp.dtype(dtype).itemsize
    return SUBLANE * max(1, 4 // itemsize)  # f32: 8, bf16: 16, int8: 32


def _tensorcores_per_device():
    """Best-effort TensorCore count per JAX device (1 on v5e/v6e, 2 on v7x)."""
    try:
        dev = jax.devices()[0]
        if dev.platform != "tpu":
            return 1
        for attr in ("num_cores", "core_count", "num_cores_per_chip"):
            v = getattr(dev, attr, None)
            if isinstance(v, int) and v > 0:
                return v
        kind = (getattr(dev, "device_kind", "") or "").lower()
        if "v7" in kind:
            return 2
    except Exception:
        pass
    return 1


def _focal_elementwise(x, t, alpha1, alpha2, gamma, *, in_kernel=False,
                       approx_recip=False):
    """Per-element focal loss in f32. Shared by the kernel and the JAX tail."""
    x = x.astype(jnp.float32)
    t = t.astype(jnp.float32)
    ax = jnp.abs(x)
    e = jnp.exp(-ax)  # single EUP exp, reused below
    # Numerically stable BCEWithLogitsLoss (reduction='none'):
    #   max(x, 0) - x*t + log1p(exp(-|x|))
    bce = jnp.maximum(x, 0.0) - x * t + jnp.log1p(e)
    denom = 1.0 + e
    if in_kernel and approx_recip:
        inv = pl.reciprocal(denom, approx=True)  # EUP vrcp (free slot)
    else:
        inv = 1.0 / denom
    # sigmoid(x) derived from the same exp(-|x|) (saves a second EUP exp).
    p = jnp.where(x >= 0.0, inv, e * inv)
    # d == 1 - p_t, expanded to skip the 1-t / 1-p / p_t temporaries (VPU trim).
    tp = t * p
    d = t + p - 2.0 * tp
    if float(gamma) == 2.0:
        fw = d * d  # avoid pow -> exp(gamma*log(d)) on the EUP
    else:
        fw = jnp.power(jnp.maximum(d, 0.0), jnp.float32(gamma))
    if alpha1 is not None and alpha2 is not None:
        # alpha_factor = t*alpha2 + (1-t)*alpha1 == alpha1 + t*(alpha2-alpha1)
        fw = (jnp.float32(alpha1) + t * jnp.float32(alpha2 - alpha1)) * fw
    return fw * bce


def _focal_loss_kernel(x_ref, t_ref, o_ref, *, alpha1, alpha2, gamma,
                       approx_recip, tile_rows, steps_per_split,
                       last_full_block, rows_valid, need_mask):
    """One grid step processes a (tile_rows, 128) tile of logits/targets.

    o_ref: (8, 128) f32 output block per grid split, used directly as the
    per-lane accumulator across the inner ('arbitrary') grid axis.
    """
    c = pl.program_id(0)
    i = pl.program_id(1)

    @pl.when(i == 0)
    def _():
        o_ref[...] = jnp.zeros_like(o_ref)

    loss = _focal_elementwise(x_ref[...], t_ref[...], alpha1, alpha2, gamma,
                              in_kernel=True, approx_recip=approx_recip)

    def accumulate(vals):
        # Fold (tile_rows, 128) -> (tile_rows//8, 8, 128); reduce the leading
        # axis with plain VPU adds into the per-lane accumulator.
        o_ref[...] += vals.reshape(-1, SUBLANE, LANE).sum(axis=0)

    if need_mask:
        blk = c * steps_per_split + i  # intended (unclamped) block index

        @pl.when(blk < last_full_block)
        def _():
            accumulate(loss)

        @pl.when(blk >= last_full_block)
        def _():
            # Row-level mask: only blocks at/after last_full_block can hold
            # rows >= rows_valid (ragged last block or clamped duplicate).
            # Keep jnp.where (select) so undefined OOB data never propagates.
            row = lax.broadcasted_iota(jnp.int32, loss.shape, 0)
            valid = (blk * tile_rows + row) < rows_valid
            accumulate(jnp.where(valid, loss, 0.0))
    else:
        accumulate(loss)


def focal_loss(inputs, targets, *, alpha1=0.25, alpha2=0.75, gamma=2.0,
               reduction="mean", tile_rows=4096, approx_reciprocal=False):
    """Focal loss over arbitrary-shaped logits/targets (e.g. NCHW).

    Returns a scalar for reduction in {'mean', 'sum'}.
    """
    assert inputs.shape == targets.shape
    # TODO(synk): reduction='none' (elementwise map output) not implemented;
    # it would need an elementwise out_spec instead of this reduction kernel.
    assert reduction in ("mean", "sum")

    n = int(inputs.size)
    x_flat = inputs.reshape(-1)
    t_flat = targets.reshape(-1)
    rows = n // LANE

    sub = max(_sublane_rows(inputs.dtype), _sublane_rows(targets.dtype))
    use_kernel = rows >= sub  # tiny inputs go straight through plain JAX
    kernel_elems = rows * LANE if use_kernel else 0

    total = jnp.float32(0.0)

    if use_kernel:
        if kernel_elems < n:
            # TODO(synk): this slice materializes a near-full extra copy of
            # both inputs (extra HBM read+write) for non-128-aligned numel;
            # an in-kernel flat-index mask over the unsliced buffers would
            # avoid that ~2x traffic. Aligned numel takes the free reshape.
            x2 = x_flat[:kernel_elems].reshape(rows, LANE)
            t2 = t_flat[:kernel_elems].reshape(rows, LANE)
        else:
            # numel is 128-aligned: reshape only, no copy.
            x2 = x_flat.reshape(rows, LANE)
            t2 = t_flat.reshape(rows, LANE)

        # Tile rows: as large as allowed, rounded DOWN to the dtype's sublane
        # multiple so the block layout is clean and the in-kernel
        # (-1, 8, 128) fold is exact. Always <= rows (rows >= sub here).
        tile = min(int(tile_rows), rows, MAX_TILE_ROWS)
        tile = max(sub, (tile // sub) * sub)

        nblocks = -(-rows // tile)
        num_splits = max(1, min(_tensorcores_per_device(), nblocks))
        sph = -(-nblocks // num_splits)          # inner steps per split
        total_steps = num_splits * sph
        # Blocks with index < last_full_block contain only valid rows.
        last_full_block = nblocks if rows % tile == 0 else nblocks - 1
        need_mask = total_steps > last_full_block

        if total_steps == nblocks:
            def index_map(c, i, _sph=sph):
                return (c * _sph + i, 0)
        else:
            # Clamp so duplicated trailing steps re-read the last valid block
            # (their contribution is fully masked in the kernel).
            def index_map(c, i, _sph=sph, _last=nblocks - 1):
                return (jnp.minimum(c * _sph + i, _last), 0)

        kernel = functools.partial(
            _focal_loss_kernel,
            alpha1=alpha1, alpha2=alpha2, gamma=gamma,
            approx_recip=approx_reciprocal,
            tile_rows=tile, steps_per_split=sph,
            last_full_block=last_full_block, rows_valid=rows,
            need_mask=need_mask)

        # Explicit scoped-VMEM budget so large tiles also fit on v5e, whose
        # default scoped limit (16 MiB) is smaller than v6e/v7x's 32 MiB.
        in_bytes_per_row = LANE * (inputs.dtype.itemsize + targets.dtype.itemsize)
        vmem_limit = int(max(32 << 20,
                             min(64 << 20, 2 * tile * in_bytes_per_row + (8 << 20))))

        partials = pl.pallas_call(
            kernel,
            out_shape=jax.ShapeDtypeStruct((num_splits * SUBLANE, LANE),
                                           jnp.float32),
            grid_spec=pltpu.PrefetchScalarGridSpec(
                num_scalar_prefetch=0,
                grid=(num_splits, sph),
                in_specs=[
                    pl.BlockSpec((tile, LANE), index_map),
                    pl.BlockSpec((tile, LANE), index_map),
                ],
                out_specs=pl.BlockSpec((SUBLANE, LANE), lambda c, i: (c, 0)),
            ),
            # TODO(synk): on v7x, confirm via an xprof trace that the leading
            # 'parallel' axis really shards across both TensorCores; if not,
            # switch it to pltpu.CORE_PARALLEL (or restructure via core_map).
            compiler_params=pltpu.CompilerParams(
                dimension_semantics=("parallel", "arbitrary"),
                vmem_limit_bytes=vmem_limit),
        )(x2, t2)

        total = total + jnp.sum(partials)

    if kernel_elems < n:
        # Ragged (<128-element) tail — or the whole (tiny) input — in plain JAX.
        total = total + jnp.sum(
            _focal_elementwise(x_flat[kernel_elems:], t_flat[kernel_elems:],
                               alpha1, alpha2, gamma))

    if reduction == "mean":
        total = total / jnp.float32(n)
    return total


def focal_loss_ref(inputs, targets, *, alpha1=0.25, alpha2=0.75, gamma=2.0,
                   reduction="mean"):
    """Plain-JAX reference matching the PyTorch FocalLoss module."""
    x = inputs.astype(jnp.float32)
    t = targets.astype(jnp.float32)
    bce = jnp.maximum(x, 0.0) - x * t + jnp.log1p(jnp.exp(-jnp.abs(x)))
    p = jax.nn.sigmoid(x)
    p_t = t * p + (1 - t) * (1 - p)
    fw = (1.0 - p_t) ** gamma
    if alpha1 is not None and alpha2 is not None:
        fw = (t * alpha2 + (1 - t) * alpha1) * fw
    loss = fw * bce
    return loss.mean() if reduction == "mean" else loss.sum()


if __name__ == "__main__":
    key = jax.random.PRNGKey(0)
    k1, k2 = jax.random.split(key)

    # 1) Small NCHW f32: batch=2, channels=4, spatial=16x16 (numel 128-aligned).
    logits = jax.random.normal(k1, (2, 4, 16, 16), dtype=jnp.float32)
    targets = (jax.random.uniform(k2, (2, 4, 16, 16)) > 0.5).astype(jnp.float32)
    out = jax.block_until_ready(
        focal_loss(logits, targets, alpha1=0.25, alpha2=0.75, gamma=2.0,
                   reduction="mean"))
    ref = focal_loss_ref(logits, targets, alpha1=0.25, alpha2=0.75, gamma=2.0,
                         reduction="mean")
    assert jnp.allclose(out, ref, atol=1e-5, rtol=1e-5), (out, ref)

    # 2) Ragged numel + multiple blocks per split (masked/clamped path + tail).
    logits2 = jax.random.normal(k1, (3, 5, 21, 17), dtype=jnp.float32)
    targets2 = (jax.random.uniform(k2, (3, 5, 21, 17)) > 0.5).astype(jnp.float32)
    out2 = jax.block_until_ready(
        focal_loss(logits2, targets2, alpha1=0.25, alpha2=0.75, gamma=2.0,
                   reduction="sum", tile_rows=16))
    ref2 = focal_loss_ref(logits2, targets2, alpha1=0.25, alpha2=0.75,
                          gamma=2.0, reduction="sum")
    assert jnp.allclose(out2, ref2, atol=1e-4, rtol=1e-5), (out2, ref2)

    # 2b) Same ragged shape with the default tile (exercises round-down tiling).
    out2b = jax.block_until_ready(
        focal_loss(logits2, targets2, alpha1=0.25, alpha2=0.75, gamma=2.0,
                   reduction="sum"))
    assert jnp.allclose(out2b, ref2, atol=1e-4, rtol=1e-5), (out2b, ref2)

    # 3) bf16 inputs streamed as-is (no wrapper upcast), sublane multiple = 16.
    logits3 = jax.random.normal(k1, (3, 16, 128), dtype=jnp.float32).astype(jnp.bfloat16)
    targets3 = (jax.random.uniform(k2, (3, 16, 128)) > 0.5).astype(jnp.bfloat16)
    out3 = jax.block_until_ready(
        focal_loss(logits3, targets3, alpha1=0.25, alpha2=0.75, gamma=2.0,
                   reduction="mean", tile_rows=24))
    ref3 = focal_loss_ref(logits3, targets3, alpha1=0.25, alpha2=0.75,
                          gamma=2.0, reduction="mean")
    assert jnp.allclose(out3, ref3, atol=1e-5, rtol=1e-5), (out3, ref3)

    # 4) Approximate-reciprocal (EUP vrcp) path, looser tolerance.
    out4 = jax.block_until_ready(
        focal_loss(logits, targets, alpha1=0.25, alpha2=0.75, gamma=2.0,
                   reduction="mean", approx_reciprocal=True))
    assert jnp.allclose(out4, ref, atol=1e-3, rtol=1e-2), (out4, ref)

    # 5) Tiny (<1 lane row) input -> pure plain-JAX fallback path.
    logits5 = jax.random.normal(k1, (2, 60), dtype=jnp.float32)
    targets5 = (jax.random.uniform(k2, (2, 60)) > 0.5).astype(jnp.float32)
    out5 = jax.block_until_ready(
        focal_loss(logits5, targets5, alpha1=0.25, alpha2=0.75, gamma=2.0,
                   reduction="mean"))
    ref5 = focal_loss_ref(logits5, targets5, alpha1=0.25, alpha2=0.75,
                          gamma=2.0, reduction="mean")
    assert jnp.allclose(out5, ref5, atol=1e-5, rtol=1e-5), (out5, ref5)

    print("KERNEL_OK")
</pallas_src>

<mosaic_0001>
module attributes {stable_mosaic.version = 11 : i64} {
  func.func @_focal_loss_kernel(%arg0: i32, %arg1: i32, %arg2: memref<16x128xf32, #tpu.memory_space<vmem>>, %arg3: memref<16x128xf32, #tpu.memory_space<vmem>>, %arg4: memref<8x128xf32, #tpu.memory_space<vmem>>) attributes {dimension_semantics = [#tpu.dimension_semantics<parallel>, #tpu.dimension_semantics<arbitrary>], iteration_bounds = array<i64: 1, 1>, scalar_prefetch = 0 : i64, scratch_operands = 0 : i64, tpu.core_type = #tpu.core_type<tc>, window_params = [{transform_indices = @transform_0, window_bounds = array<i64: 16, 128>}, {transform_indices = @transform_1, window_bounds = array<i64: 16, 128>}, {transform_indices = @transform_2, window_bounds = array<i64: 8, 128>}]} {
    %c0_i32 = arith.constant 0 : i32
    %0 = arith.cmpi eq, %arg1, %c0_i32 : i32
    %1 = arith.extui %0 : i1 to i32
    %c0_i32_0 = arith.constant 0 : i32
    %2 = arith.cmpi ne, %1, %c0_i32_0 : i32
    scf.if %2 {
      %cst_16 = arith.constant 0.000000e+00 : f32
      %40 = vector.broadcast %cst_16 : f32 to vector<8x128xf32>
      %c0_17 = arith.constant 0 : index
      %c0_18 = arith.constant 0 : index
      %41 = vector.load %arg4[%c0_17, %c0_18] : memref<8x128xf32, #tpu.memory_space<vmem>>, vector<8x128xf32>
      tpu.vector_store %arg4[%c0_17, %c0_18], %40 {strides = array<i32>} : memref<8x128xf32, #tpu.memory_space<vmem>>, vector<8x128xf32>,
    } else {
    }
    %c0 = arith.constant 0 : index
    %c0_1 = arith.constant 0 : index
    %3 = vector.load %arg2[%c0, %c0_1] : memref<16x128xf32, #tpu.memory_space<vmem>>, vector<16x128xf32>
    %c0_2 = arith.constant 0 : index
    %c0_3 = arith.constant 0 : index
    %4 = vector.load %arg3[%c0_2, %c0_3] : memref<16x128xf32, #tpu.memory_space<vmem>>, vector<16x128xf32>
    %5 = math.absf %3 : vector<16x128xf32>
    %cst = arith.constant 0.000000e+00 : f32
    %6 = vector.broadcast %cst : f32 to vector<16x128xf32>
    %7 = arith.subf %6, %5 : vector<16x128xf32>
    %8 = math.exp %7 : vector<16x128xf32>
    %cst_4 = arith.constant 0.000000e+00 : f32
    %9 = vector.broadcast %cst_4 : f32 to vector<16x128xf32>
    %10 = arith.maximumf %3, %9 : vector<16x128xf32>
    %11 = arith.mulf %3, %4 : vector<16x128xf32>
    %12 = arith.subf %10, %11 : vector<16x128xf32>
    %13 = math.log1p %8 : vector<16x128xf32>
    %14 = arith.addf %12, %13 : vector<16x128xf32>
    %cst_5 = arith.constant 1.000000e+00 : f32
    %15 = vector.broadcast %cst_5 : f32 to vector<16x128xf32>
    %16 = arith.addf %15, %8 : vector<16x128xf32>
    %cst_6 = arith.constant 1.000000e+00 : f32
    %17 = vector.broadcast %cst_6 : f32 to vector<16x128xf32>
    %18 = arith.divf %17, %16 : vector<16x128xf32>
    %cst_7 = arith.constant 0.000000e+00 : f32
    %19 = vector.broadcast %cst_7 : f32 to vector<16x128xf32>
    %20 = arith.cmpf oge, %3, %19 : vector<16x128xf32>
    %21 = arith.mulf %8, %18 : vector<16x128xf32>
    %22 = arith.select %20, %18, %21 : vector<16x128xi1>, vector<16x128xf32>
    %23 = arith.mulf %4, %22 : vector<16x128xf32>
    %24 = arith.addf %4, %22 : vector<16x128xf32>
    %cst_8 = arith.constant 2.000000e+00 : f32
    %25 = vector.broadcast %cst_8 : f32 to vector<16x128xf32>
    %26 = arith.mulf %25, %23 : vector<16x128xf32>
    %27 = arith.subf %24, %26 : vector<16x128xf32>
    %28 = arith.mulf %27, %27 : vector<16x128xf32>
    %cst_9 = arith.constant 5.000000e-01 : f32
    %29 = vector.broadcast %cst_9 : f32 to vector<16x128xf32>
    %30 = arith.mulf %4, %29 : vector<16x128xf32>
    %cst_10 = arith.constant 2.500000e-01 : f32
    %31 = vector.broadcast %cst_10 : f32 to vector<16x128xf32>
    %32 = arith.addf %31, %30 : vector<16x128xf32>
    %33 = arith.mulf %32, %28 : vector<16x128xf32>
    %34 = arith.mulf %33, %14 : vector<16x128xf32>
    %c0_11 = arith.constant 0 : index
    %c0_12 = arith.constant 0 : index
    %35 = vector.load %arg4[%c0_11, %c0_12] : memref<8x128xf32, #tpu.memory_space<vmem>>, vector<8x128xf32>
    %36 = vector.shape_cast %34 : vector<16x128xf32> to vector<2x8x128xf32>
    %cst_13 = arith.constant dense<0.000000e+00> : vector<8x128xf32>
    %37 = vector.multi_reduction <add>, %36, %cst_13 [0] : vector<2x8x128xf32> to vector<8x128xf32>
    %38 = arith.addf %35, %37 : vector<8x128xf32>
    %c0_14 = arith.constant 0 : index
    %c0_15 = arith.constant 0 : index
    %39 = vector.load %arg4[%c0_14, %c0_15] : memref<8x128xf32, #tpu.memory_space<vmem>>, vector<8x128xf32>
    tpu.vector_store %arg4[%c0_14, %c0_15], %38 {strides = array<i32>} : memref<8x128xf32, #tpu.memory_space<vmem>>, vector<8x128xf32>,
    return
  }
  func.func @transform_0(%arg0: i32, %arg1: i32) -> (i32, i32) {
    %c1_i32 = arith.constant 1 : i32
    %0 = arith.muli %arg0, %c1_i32 : i32
    %1 = arith.addi %0, %arg1 : i32
    %c0_i32 = arith.constant 0 : i32
    %c0_i32_0 = arith.constant 0 : i32
    return %1, %c0_i32 : i32, i32
  }
  func.func @transform_1(%arg0: i32, %arg1: i32) -> (i32, i32) {
    %c1_i32 = arith.constant 1 : i32
    %0 = arith.muli %arg0, %c1_i32 : i32
    %1 = arith.addi %0, %arg1 : i32
    %c0_i32 = arith.constant 0 : i32
    %c0_i32_0 = arith.constant 0 : i32
    return %1, %c0_i32 : i32, i32
  }
  func.func @transform_2(%arg0: i32, %arg1: i32) -> (i32, i32) {
    %c0_i32 = arith.constant 0 : i32
    %c0_i32_0 = arith.constant 0 : i32
    return %arg0, %c0_i32 : i32, i32
  }
}

</mosaic_0001>

<bundles_post_ra>
// kernel: tpu_custom_call.1
= control target key start
LH: loop header
LB: loop body
LE: loop exit
PB: predicated region body
PF: predicated region fallthrough
CT: control target
= control target key end

     0   :  { %7 = vsyncpa [#allocation3], 0  ;;  %s346_s0 = inlined_call_operand.hbm [shape: f32[16,128], index: 0, kind: input, shape index: {}]   ;;  %s347_s1 = inlined_call_operand.hbm [shape: f32[16,128], index: 1, kind: input, shape index: {}]   ;;  %s348_s2 = inlined_call_operand.hbm [shape: f32[8,128], index: 2, kind: output, shape index: {}]  }
   0x1   :  { %8 = vsyncpa [#allocation6], 0 }
   0x2   :  { %9 = vsyncpa [#allocation4], 0  ;;  %s18_s11 = sshll.u32 %s346_s0, 4  ;;  %s273_s12 = smov [#allocation2]   ;;  %s19_s11 = int_to_ptr.hbm [resolvable:$true] %s18_s11 }
   0x3   :  { %s20_s13 = sshll.u32 %s273_s12, 4  ;;  %s35_s16 = sshll.u32 %s347_s1, 4  ;;  %s21_s13 = int_to_ptr.vmem [resolvable:$true] %s20_s13  ;;  %s36_s16 = int_to_ptr.hbm [resolvable:$true] %s35_s16 }
   0x4   :  { %s274_s17 = smov 128   ;;  %s275_s18 = smov 8  }
   0x5   :  { %26 = dma.hbm_to_vmem [thread:$0]  %s19_s11, 256, %s21_s13, [#allocation3], %s274_s17, %s274_s17, %s275_s18  }
   0x6   :  { %s276_s19 = smov [#allocation5]  }
   0x7   :  { %s37_s20 = sshll.u32 %s276_s19, 4  ;;  %s38_s20 = int_to_ptr.vmem [resolvable:$true] %s37_s20 }
   0x8   :  { %43 = dma.hbm_to_vmem [thread:$0]  %s36_s16, 256, %s38_s20, [#allocation6], %s274_s17, %s274_s17, %s275_s18  }
   0x9   :  { %267 = dma.done.wait [#allocation3], 256  }
   0xa   :  { %268 = vsyncadd [#allocation3], 4294967040 }
   0xb   :  { %269 = dma.done.wait [#allocation6], 256  }
   0xc   :  { %270 = vsyncadd [#allocation6], 4294967040  ;;  %v299_v0 = vld [vmem:[#allocation2] sm:$0xff]  ;;  %v301_v1 = vld [vmem:[#allocation2 + $0x8] sm:$0xff]  ;;  %s277_s0 = smov [#allocation7]   ;;  %s166_s23 = sshll.u32 %s348_s2, 4  ;;  %s167_s23 = int_to_ptr.hbm [resolvable:$true] %s166_s23 }
   0xd   :  { %v65_v2 = vand.u32 2147483647, %v299_v0  ;;  %v66_v3 = vand.u32 2147483647, %v301_v1  ;;  %v63_v32 = vld [vmem:[#allocation5] sm:$0xff]  ;;  %v73_v33 = vmax.f32 %v299_v0, 0.0 }
   0xe   :  { %v75_v36 = vmul.f32 %v63_v32, %v299_v0  ;;  %v74_v40 = vmax.f32 %v301_v1, 0.0  ;;  %vm131_vm8 = vcmp.ge.f32.partialorder %v299_v0, 0.0  ;;  %v64_v44 = vld [vmem:[#allocation5 + $0x8] sm:$0xff]  ;;  %vm132_vm9 = vcmp.ge.f32.partialorder %v301_v1, 0.0  ;;  %s164_s1 = sshll.u32 %s277_s0, 4  ;;  %s165_s1 = int_to_ptr.vmem [resolvable:$true] %s164_s1 }
   0xf   :  { %v67_v4 = vsub.f32 0.0, %v65_v2  ;;  %v68_v5 = vsub.f32 0.0, %v66_v3  ;;  %v76_v48 = vmul.f32 %v64_v44, %v301_v1  ;;  %v147_v51 = vmul.f32 0.5, %v63_v32 }
  0x10   :  { %v148_v63 = vmul.f32 0.5, %v64_v44  ;;  %v77_v0 = vsub.f32 %v73_v33, %v75_v36 }
  0x11   :  { %v69_v6 = vmul.f32 1.442695, %v67_v4  ;;  %v71_v7 = vmul.f32 1.442695, %v68_v5  ;;  %v78_v2 = vsub.f32 %v74_v40, %v76_v48 }
  0x13   :  { %183 = vpow2.f32 %v69_v6 }
  0x14   :  { %185 = vpow2.f32 %v71_v7  ;;  %v149_v7 = vadd.f32 0.25, %v147_v51 }
  0x19   :  { %v184_v8 = vpop.eup %183 }
  0x1a   :  { %v305_v9 = vpop.eup %185  ;;  %v79_v10 = vadd.f32 1.0, %v184_v8  ;;  %v82_v22 = vmul.f32 -0.5, %v184_v8  ;;  %v85_v34 = vand.u32 2147483647, %v184_v8 }
  0x1b   :  { %v88_v11 = vadd.f32 1.0, %v305_v9  ;;  %v91_v23 = vmul.f32 -0.5, %v305_v9  ;;  %v94_v45 = vand.u32 2147483647, %v305_v9 }
  0x1c   :  { %187 = vrcp.f32 %v79_v10  ;;  %vm106_vm0 = vweird.f32 %v79_v10  ;;  %v112_v15 = vand.u32 2147483648, %v79_v10  ;;  %v110_v18 = vand.u32 2147483647, %v79_v10 }
  0x1d   :  { %189 = vrcp.f32 %v88_v11  ;;  %v127_v19 = vand.u32 2147483648, %v88_v11  ;;  %vm121_vm2 = vweird.f32 %v88_v11  ;;  %v125_v21 = vand.u32 2147483647, %v88_v11 }
  0x1e   :  { %191 = vlog2.f32 %v79_v10  ;;  %v113_v26 = vor.u32 1.1754944e-38, %v112_v15  ;;  %vm111_vm5 = vcmp.eq.f32.partialorder %v110_v18, 8.507059e+37  ;;  %v83_v37 = vadd.f32 1.0, %v82_v22 }
  0x1f   :  { %193 = vlog2.f32 %v88_v11  ;;  %v128_v30 = vor.u32 1.1754944e-38, %v127_v19  ;;  %vm126_vm7 = vcmp.eq.f32.partialorder %v125_v21, 8.507059e+37  ;;  %v92_v38 = vadd.f32 1.0, %v91_v23 }
  0x20   :  { %vm329_vm10 = vcmp.lt.f32.partialorder %v85_v34, 0.0004427343  ;;  %v84_v53 = vmul.f32 %v184_v8, %v83_v37  ;;  %vm335_vm11 = vcmp.lt.f32.partialorder %v94_v45, 0.0004427343 }
  0x21   :  { %v93_v54 = vmul.f32 %v305_v9, %v92_v38 }
  0x22   :  { %v188_v12 = vpop.eup %187 }
  0x23   :  { %v190_v13 = vpop.eup %189  ;;  %v102_v14 = vmul.f32 %v188_v12, %v79_v10  ;;  %vm107_vm1 = vweird.f32 %v188_v12 }
  0x24   :  { %v117_v16 = vmul.f32 %v190_v13, %v88_v11  ;;  %vm122_vm3 = vweird.f32 %v190_v13  ;;  %vm310_vm4 = vmor %vm106_vm0, %vm107_vm1  ;;  %v192_v31 = vpop.eup %191 }
  0x25   :  { %v103_v17 = vsub.f32 1.0, %v102_v14  ;;  %vm314_vm6 = vmor %vm121_vm2, %vm122_vm3  ;;  %v194_v43 = vpop.eup %193  ;;  %v81_v52 = vmul.f32 0.6931472, %v192_v31 }
  0x26   :  { %v118_v20 = vsub.f32 1.0, %v117_v16  ;;  %v90_v56 = vmul.f32 0.6931472, %v194_v43 }
  0x27   :  { %v104_v24 = vmul.f32 %v188_v12, %v103_v17  ;;  %v87_v3 = vsel %vm329_vm10, %v84_v53, %v81_v52 }
  0x28   :  { %v119_v27 = vmul.f32 %v190_v13, %v118_v20  ;;  %v96_v5 = vsel %vm335_vm11, %v93_v54, %v90_v56  ;;  %v97_v10 = vadd.f32 %v87_v3, %v77_v0 }
  0x29   :  { %v105_v28 = vadd.f32 %v188_v12, %v104_v24 }
  0x2a   :  { %v120_v35 = vadd.f32 %v190_v13, %v119_v27 }
  0x2b   :  { %v109_v39 = vsel %vm310_vm4, %v188_v12, %v105_v28  ;;  %v98_v12 = vadd.f32 %v96_v5, %v78_v2 }
  0x2c   :  { %v114_v41 = vsel %vm111_vm5, %v113_v26, %v109_v39  ;;  %v124_v42 = vsel %vm314_vm6, %v190_v13, %v120_v35 }
  0x2d   :  { %v129_v46 = vsel %vm126_vm7, %v128_v30, %v124_v42  ;;  %v133_v47 = vmul.f32 %v184_v8, %v114_v41 }
  0x2e   :  { %v134_v50 = vmul.f32 %v305_v9, %v129_v46  ;;  %v150_v9 = vadd.f32 0.25, %v148_v63 }
  0x2f   :  { %v135_v55 = vsel %vm131_vm8, %v114_v41, %v133_v47 }
  0x30   :  { %v136_v57 = vsel %vm132_vm9, %v129_v46, %v134_v50  ;;  %v137_v58 = vmul.f32 %v135_v55, %v63_v32  ;;  %v139_v59 = vadd.f32 %v135_v55, %v63_v32 }
  0x31   :  { %v138_v61 = vmul.f32 %v136_v57, %v64_v44  ;;  %v140_v62 = vadd.f32 %v136_v57, %v64_v44 }
  0x32   :  { %v141_v1 = vmul.f32 2.0, %v137_v58 }
  0x33   :  { %v142_v4 = vmul.f32 2.0, %v138_v61 }
  0x34   :  { %v143_v6 = vsub.f32 %v139_v59, %v141_v1 }
  0x35   :  { %v144_v8 = vsub.f32 %v140_v62, %v142_v4 }
  0x36   :  { %v145_v11 = vmul.f32 %v143_v6, %v143_v6 }
  0x37   :  { %v146_v13 = vmul.f32 %v144_v8, %v144_v8 }
  0x38   :  { %v151_v14 = vmul.f32 %v149_v7, %v145_v11 }
  0x39   :  { %v152_v15 = vmul.f32 %v150_v9, %v146_v13 }
  0x3a   :  { %v153_v16 = vmul.f32 %v151_v14, %v97_v10 }
  0x3b   :  { %v154_v17 = vmul.f32 %v152_v15, %v98_v12 }
  0x3d   :  { %v156_v18 = vadd.f32 %v154_v17, %v153_v16 }
  0x3f   :  { %158 = vst [vmem:[#allocation7] sm:$0xff] %v156_v18 }
  0x40   :  { %169 = dma.vmem_to_hbm [thread:$0]  %s165_s1, 128, %s167_s23, [#allocation4]  }
  0x41   :  { %271 = dma.done.wait [#allocation4], 128  }
  0x42   :  { %272 = vsyncadd [#allocation4], 4294967168 }
  0x43   :  { %174 = vsyncpa [#allocation3], 1 }
  0x44   :  { %175 = vsyncpa [#allocation6], 1 }
  0x45   :  { %176 = vsyncpa [#allocation4], 1 }

</bundles_post_ra>
